<compile_context>
chip_gen: v7x
topology: tpu7x:2x2x1
jax: 0.10.0
libtpu: 0.0.40
codegen_flags: <defaults>
</compile_context>

<pallas_src>
import functools

import jax
import jax.numpy as jnp
from jax import lax
from jax.experimental import pallas as pl
from jax.experimental.pallas import tpu as pltpu

# TODO(synk): CRF loss()/decode() (log-partition + Viterbi) are not part of
# forward() and the CRF class is not defined in the reference snippet, so they
# are not implemented here.


def _round_up(x, m):
    return (x + m - 1) // m * m


def _pick_chunk(total, cap):
    """Largest chunk <= cap that divides total (falls back to full/1)."""
    if total <= cap:
        return total
    for t in range(cap, 0, -1):
        if total % t == 0:
            return t
    return 1


def _pick_block(n, cap, mult):
    """Largest multiple of `mult` <= cap that divides n (requires n % mult == 0).

    Guards the "fall back to the full dimension" VMEM blowout: result is
    always <= cap (and at least `mult`)."""
    assert n % mult == 0, (n, mult)
    if n <= cap:
        return n
    t = (cap // mult) * mult
    while t > mult:
        if n % t == 0:
            return t
        t -= mult
    return mult


# ----------------------- generic tiled matmul + bias -----------------------

def _matmul_bias_kernel(a_ref, b_ref, bias_ref, o_ref, acc_ref):
    @pl.when(pl.program_id(2) == 0)
    def _():
        acc_ref[...] = jnp.zeros_like(acc_ref)

    acc_ref[...] += jnp.dot(a_ref[...], b_ref[...],
                            preferred_element_type=jnp.float32)

    @pl.when(pl.program_id(2) == pl.num_programs(2) - 1)
    def _():
        o_ref[...] = (acc_ref[...] + bias_ref[...]).astype(o_ref.dtype)


def _matmul_bias(a, b, bias, *, out_dtype=jnp.float32):
    """a: (M, K), b: (K, N), bias: (N,)  ->  a @ b + bias  (f32 accumulation).

    Caller guarantees: M % 8 == 0; N % 128 == 0 (or N <= 512);
    K % 128 == 0 whenever K > 512.  Tiles are capped at 512 so the f32
    accumulator + double-buffered A/B blocks stay well under the scoped VMEM
    default on every generation."""
    M, K = a.shape
    K2, N = b.shape
    assert K == K2
    tm = M if M <= 512 else _pick_block(M, 512, 8)
    tn = N if N <= 512 else _pick_block(N, 512, 128)
    tk = K if K <= 512 else _pick_block(K, 512, 128)
    bias2d = bias.reshape(1, N).astype(jnp.float32)
    return pl.pallas_call(
        _matmul_bias_kernel,
        out_shape=jax.ShapeDtypeStruct((M, N), out_dtype),
        grid_spec=pltpu.PrefetchScalarGridSpec(
            num_scalar_prefetch=0,
            grid=(M // tm, N // tn, K // tk),
            in_specs=[
                pl.BlockSpec((tm, tk), lambda i, j, k: (i, k)),
                pl.BlockSpec((tk, tn), lambda i, j, k: (k, j)),
                pl.BlockSpec((1, tn), lambda i, j, k: (0, j)),
            ],
            out_specs=pl.BlockSpec((tm, tn), lambda i, j, k: (i, j)),
            scratch_shapes=[pltpu.VMEM((tm, tn), jnp.float32)],
        ),
        compiler_params=pltpu.CompilerParams(
            dimension_semantics=("parallel", "parallel", "arbitrary")),
    )(a, b, bias2d)


# ------------------- LSTM recurrence (+ fused final FC) ---------------------

def _lstm_recurrence_kernel(pg_ref, whh_ref, wfc_ref, bfc_ref, emis_ref,
                            h_sc, c_sc, *, unroll):
    # Grid = (batch tiles [parallel], time chunks [arbitrary/serial]).  The
    # time axis MUST stay innermost so the s==0 reset fires for every batch
    # tile before any of its time chunks are processed.
    s = pl.program_id(1)
    hp = h_sc.shape[-1]

    @pl.when(s == 0)
    def _():
        h_sc[...] = jnp.zeros_like(h_sc)
        c_sc[...] = jnp.zeros_like(c_sc)

    # Weights hoisted out of the time loop (LSTM biases already folded into the
    # hoisted pre-gates).
    whh = whh_ref[...]                   # (Hp, 4*Hp) bf16, grid-invariant
    t_chunk = pg_ref.shape[0]

    def step(t, carry):
        h, c = carry
        # gates = precomputed(x@W_ih^T + b_ih + b_hh)  +  h @ W_hh^T
        # pre-gates streamed in bf16; gate math stays f32 (v5e-safe).
        gates = pg_ref[t].astype(jnp.float32) + jnp.dot(
            h.astype(whh.dtype), whh, preferred_element_type=jnp.float32)
        # Hp is a multiple of 128 -> each gate slice is lane-aligned.
        i_g = jax.nn.sigmoid(gates[:, 0 * hp:1 * hp])
        f_g = jax.nn.sigmoid(gates[:, 1 * hp:2 * hp])
        g_g = jnp.tanh(gates[:, 2 * hp:3 * hp])
        o_g = jax.nn.sigmoid(gates[:, 3 * hp:4 * hp])
        c = f_g * c + i_g * g_g
        h = o_g * jnp.tanh(c)
        return h, c

    h, c = lax.fori_loop(0, t_chunk, step, (h_sc[...], c_sc[...]),
                         unroll=unroll)
    h_sc[...] = h
    c_sc[...] = c

    # Fused final FC: h_T is resident in VMEM at the last time chunk, so the
    # emissions are produced here (no extra kernel launch / HBM round trip).
    @pl.when(s == pl.num_programs(1) - 1)
    def _():
        emis = jnp.dot(h.astype(wfc_ref.dtype), wfc_ref[...],
                       preferred_element_type=jnp.float32) + bfc_ref[...]
        emis_ref[...] = emis.astype(emis_ref.dtype)


def _lstm_recurrence_fc(pre_gates_tm, w_hh_t, w_fc_t, b_fc, *,
                        batch_tile, t_chunk, unroll, vmem_limit_bytes):
    """pre_gates_tm: (T, Bp, 4*Hp) bf16, w_hh_t: (Hp, 4*Hp) bf16,
    w_fc_t: (Hp, SOp) bf16, b_fc: (SOp,) f32  ->  emissions (Bp, SOp) f32."""
    T, Bp, G = pre_gates_tm.shape
    Hp = w_hh_t.shape[0]
    SOp = w_fc_t.shape[1]
    bfc2d = b_fc.reshape(1, SOp).astype(jnp.float32)
    kernel = functools.partial(_lstm_recurrence_kernel, unroll=unroll)
    return pl.pallas_call(
        kernel,
        out_shape=jax.ShapeDtypeStruct((Bp, SOp), jnp.float32),
        grid_spec=pltpu.PrefetchScalarGridSpec(
            num_scalar_prefetch=0,
            grid=(Bp // batch_tile, T // t_chunk),
            in_specs=[
                # streamed per time-chunk (double-buffered by Pallas)
                pl.BlockSpec((t_chunk, batch_tile, G), lambda b, s: (s, b, 0)),
                # grid-invariant weights (constant index map -> stay resident)
                pl.BlockSpec((Hp, G), lambda b, s: (0, 0)),
                pl.BlockSpec((Hp, SOp), lambda b, s: (0, 0)),
                pl.BlockSpec((1, SOp), lambda b, s: (0, 0)),
            ],
            # constant across the serial time axis -> resident accumulator,
            # written only on the last time chunk.
            out_specs=pl.BlockSpec((batch_tile, SOp), lambda b, s: (b, 0)),
            scratch_shapes=[
                pltpu.VMEM((batch_tile, Hp), jnp.float32),   # h state
                pltpu.VMEM((batch_tile, Hp), jnp.float32),   # c state
            ],
        ),
        compiler_params=pltpu.CompilerParams(
            dimension_semantics=("parallel", "arbitrary"),
            vmem_limit_bytes=vmem_limit_bytes),
    )(pre_gates_tm, w_hh_t, w_fc_t, bfc2d)


# --------------------------------- wrapper ----------------------------------

def lstm_crf_forward(x, params, *, hidden_dim, output_dim, output_seq_length):
    """x: (B, T, D) float32 (batch_first, like PyTorch). Returns (B, S, O)."""
    B, T, D = x.shape
    H = hidden_dim
    S, O = output_seq_length, output_dim
    SO = S * O

    Hp = _round_up(H, 128)        # lane-aligned gate slices
    G = 4 * Hp
    Bp = _round_up(B, 8)          # full sublanes / MXU rows
    SOp = _round_up(SO, 128)      # lane-dense FC output
    # pad the contraction dim only if it would otherwise force an oversized
    # K-tile (zero padding on K is exact).
    Dp = D if D <= 512 else _round_up(D, 128)

    bf16 = jnp.bfloat16

    # --- weight prep: pad hidden per gate block, pad FC output; zero padding
    #     is exact (padded hidden units have zero weights/bias and stay zero).
    w_ih_p = jnp.pad(params["w_ih"].reshape(4, H, D),
                     ((0, 0), (0, Hp - H), (0, Dp - D))).reshape(G, Dp)
    w_hh_p = jnp.pad(params["w_hh"].reshape(4, H, H),
                     ((0, 0), (0, Hp - H), (0, Hp - H))).reshape(G, Hp)
    b_p = jnp.pad((params["b_ih"] + params["b_hh"]).reshape(4, H),
                  ((0, 0), (0, Hp - H))).reshape(G)
    w_fc_p = jnp.pad(params["w_fc"], ((0, SOp - SO), (0, Hp - H)))
    b_fc_p = jnp.pad(params["b_fc"], (0, SOp - SO))

    # MXU operands in bf16; accumulation stays f32 inside the kernels.
    wih_t = w_ih_p.T.astype(bf16)        # (Dp, 4*Hp)
    whh_t = w_hh_p.T.astype(bf16)        # (Hp, 4*Hp)
    wfc_t = w_fc_p.T.astype(bf16)        # (Hp, SOp)

    # --- batch pad + time-major flatten of the (cheap, D-wide) input.
    x_p = jnp.pad(x, ((0, Bp - B), (0, 0), (0, Dp - D)))
    x_tm = jnp.transpose(x_p, (1, 0, 2)).reshape(T * Bp, Dp).astype(bf16)

    # 1) input projection hoisted out of the recurrence: one big MXU matmul,
    #    both LSTM biases folded in.  Output in bf16: halves HBM writeback and
    #    the streamed read in the (DMA-bound) recurrence.
    pre_gates = _matmul_bias(x_tm, wih_t, b_p,
                             out_dtype=bf16).reshape(T, Bp, G)

    # 2) serial recurrence (+ fused FC epilogue).
    #    batch_tile: split into >=2 parallel tiles when Bp >= 16 so v7x's
    #    second TensorCore isn't idle (no effect on v5e/v6e).
    if Bp >= 16:
        batch_tile = _pick_block(Bp, max(8, min(256, Bp // 2)), 8)
    else:
        batch_tile = Bp

    #    t_chunk from an explicit VMEM budget (v7x: 64 MiB physical; v5e:
    #    16 MiB scoped default — we raise it via vmem_limit_bytes below).
    budget = 36 << 20
    fixed_vmem = (2 * Hp * G * 2            # W_hh bf16 (double-buffered)
                  + 2 * Hp * SOp * 2        # W_fc bf16
                  + 2 * SOp * 4             # b_fc f32
                  + 2 * batch_tile * Hp * 4     # h, c scratch (f32)
                  + 2 * batch_tile * SOp * 4)   # output (double-buffered)
    per_step_vmem = 2 * batch_tile * G * 2  # bf16 pre-gate rows, double-buffered
    t_cap = max(1, min(128, (budget - fixed_vmem) // per_step_vmem))
    t_chunk = _pick_chunk(T, int(t_cap))

    vmem_need = fixed_vmem + per_step_vmem * t_chunk + (2 << 20)
    vmem_limit = int(min(max(vmem_need, 32 << 20), 48 << 20))

    #    unroll: full unroll only when the per-step body (h/c/gates live
    #    ranges over batch_tile x Hp) comfortably fits in vregs; otherwise a
    #    modest unroll keeps LLO visibility without spill traffic.
    body_elems = batch_tile * Hp
    if body_elems <= 32 * 1024:
        unroll = True if t_chunk <= 32 else 4
    elif body_elems <= 128 * 1024:
        unroll = 4
    else:
        unroll = 2

    emis = _lstm_recurrence_fc(pre_gates, whh_t, wfc_t, b_fc_p,
                               batch_tile=batch_tile, t_chunk=t_chunk,
                               unroll=unroll, vmem_limit_bytes=vmem_limit)

    return emis[:B, :SO].reshape(B, S, O)


# ------------------------------ reference / test -----------------------------

def _reference_forward(x, params, *, hidden_dim, output_dim, output_seq_length):
    """Pure-JAX f32 reference matching nn.LSTM(batch_first=True) + Linear."""
    B, T, D = x.shape
    H = hidden_dim

    def step(carry, x_t):
        h, c = carry
        gates = x_t @ params["w_ih"].T + params["b_ih"] \
            + h @ params["w_hh"].T + params["b_hh"]
        i = jax.nn.sigmoid(gates[:, 0 * H:1 * H])
        f = jax.nn.sigmoid(gates[:, 1 * H:2 * H])
        g = jnp.tanh(gates[:, 2 * H:3 * H])
        o = jax.nn.sigmoid(gates[:, 3 * H:4 * H])
        c = f * c + i * g
        h = o * jnp.tanh(c)
        return (h, c), None

    h0 = jnp.zeros((B, H), jnp.float32)
    c0 = jnp.zeros((B, H), jnp.float32)
    (h_T, _), _ = jax.lax.scan(step, (h0, c0), jnp.transpose(x, (1, 0, 2)))
    emis = h_T @ params["w_fc"].T + params["b_fc"]
    return emis.reshape(B, output_seq_length, output_dim)


def init_params(key, input_dim, hidden_dim, output_dim, output_seq_length):
    H, D, SO = hidden_dim, input_dim, output_dim * output_seq_length
    ks = jax.random.split(key, 6)
    scale = 0.1
    return {
        "w_ih": scale * jax.random.normal(ks[0], (4 * H, D), jnp.float32),
        "w_hh": scale * jax.random.normal(ks[1], (4 * H, H), jnp.float32),
        "b_ih": scale * jax.random.normal(ks[2], (4 * H,), jnp.float32),
        "b_hh": scale * jax.random.normal(ks[3], (4 * H,), jnp.float32),
        "w_fc": scale * jax.random.normal(ks[4], (SO, H), jnp.float32),
        "b_fc": scale * jax.random.normal(ks[5], (SO,), jnp.float32),
    }


if __name__ == "__main__":
    input_dim = 16
    hidden_dim = 32
    output_dim = 8
    output_seq_length = 4
    batch = 4
    seq_len = 8

    key = jax.random.PRNGKey(0)
    k_x, k_p = jax.random.split(key)
    x = jax.random.normal(k_x, (batch, seq_len, input_dim), jnp.float32)
    params = init_params(k_p, input_dim, hidden_dim, output_dim,
                         output_seq_length)

    emissions = lstm_crf_forward(
        x, params, hidden_dim=hidden_dim, output_dim=output_dim,
        output_seq_length=output_seq_length)
    emissions = jax.block_until_ready(emissions)

    ref = _reference_forward(
        x, params, hidden_dim=hidden_dim, output_dim=output_dim,
        output_seq_length=output_seq_length)

    assert emissions.shape == (batch, output_seq_length, output_dim)
    max_err = float(jnp.max(jnp.abs(emissions - ref)))
    # bf16 MXU operands + bf16 pre-gates (f32 accumulation / f32 gate math)
    # vs f32 reference.
    assert max_err < 5e-2, f"mismatch vs reference: max abs err {max_err}"

    print("KERNEL_OK")
</pallas_src>

<mosaic_0001>
module attributes {stable_mosaic.version = 11 : i64} {
  func.func @_matmul_bias_kernel(%arg0: i32, %arg1: i32, %arg2: i32, %arg3: memref<64x16xbf16, #tpu.memory_space<vmem>>, %arg4: memref<16x512xbf16, #tpu.memory_space<vmem>>, %arg5: memref<1x512xf32, #tpu.memory_space<vmem>>, %arg6: memref<64x512xbf16, #tpu.memory_space<vmem>>, %arg7: memref<64x512xf32, #tpu.memory_space<vmem>>) attributes {dimension_semantics = [#tpu.dimension_semantics<parallel>, #tpu.dimension_semantics<parallel>, #tpu.dimension_semantics<arbitrary>], iteration_bounds = array<i64: 1, 1, 1>, scalar_prefetch = 0 : i64, scratch_operands = 1 : i64, tpu.core_type = #tpu.core_type<tc>, window_params = [{transform_indices = @transform_0, window_bounds = array<i64: 64, 16>}, {transform_indices = @transform_1, window_bounds = array<i64: 16, 512>}, {transform_indices = @transform_2, window_bounds = array<i64: 1, 512>}, {transform_indices = @transform_3, window_bounds = array<i64: 64, 512>}]} {
    %c0_i32 = arith.constant 0 : i32
    %0 = arith.cmpi eq, %arg2, %c0_i32 : i32
    %1 = arith.extui %0 : i1 to i32
    %c0_i32_0 = arith.constant 0 : i32
    %2 = arith.cmpi ne, %1, %c0_i32_0 : i32
    scf.if %2 {
      %cst_10 = arith.constant 0.000000e+00 : f32
      %12 = vector.broadcast %cst_10 : f32 to vector<64x512xf32>
      %c0_11 = arith.constant 0 : index
      %c0_12 = arith.constant 0 : index
      %13 = vector.load %arg7[%c0_11, %c0_12] : memref<64x512xf32, #tpu.memory_space<vmem>>, vector<64x512xf32>
      tpu.vector_store %arg7[%c0_11, %c0_12], %12 {strides = array<i32>} : memref<64x512xf32, #tpu.memory_space<vmem>>, vector<64x512xf32>,
    } else {
    }
    %c0 = arith.constant 0 : index
    %c0_1 = arith.constant 0 : index
    %3 = vector.load %arg7[%c0, %c0_1] : memref<64x512xf32, #tpu.memory_space<vmem>>, vector<64x512xf32>
    %c0_2 = arith.constant 0 : index
    %c0_3 = arith.constant 0 : index
    %4 = vector.load %arg3[%c0_2, %c0_3] : memref<64x16xbf16, #tpu.memory_space<vmem>>, vector<64x16xbf16>
    %c0_4 = arith.constant 0 : index
    %c0_5 = arith.constant 0 : index
    %5 = vector.load %arg4[%c0_4, %c0_5] : memref<16x512xbf16, #tpu.memory_space<vmem>>, vector<16x512xbf16>
    %cst = arith.constant dense<0.000000e+00> : vector<64x512xf32>
    %6 = tpu.matmul %4, %5, %cst {dimension_numbers = #tpu.dot_dimension_numbers<[1], [0], [0], [1], [0, 0, 1, 1], [], []>} : vector<64x16xbf16>, vector<16x512xbf16>, vector<64x512xf32> -> vector<64x512xf32>
    %7 = arith.addf %3, %6 : vector<64x512xf32>
    %c0_6 = arith.constant 0 : index
    %c0_7 = arith.constant 0 : index
    %8 = vector.load %arg7[%c0_6, %c0_7] : memref<64x512xf32, #tpu.memory_space<vmem>>, vector<64x512xf32>
    tpu.vector_store %arg7[%c0_6, %c0_7], %7 {strides = array<i32>} : memref<64x512xf32, #tpu.memory_space<vmem>>, vector<64x512xf32>,
    %c0_i32_8 = arith.constant 0 : i32
    %9 = arith.cmpi eq, %arg2, %c0_i32_8 : i32
    %10 = arith.extui %9 : i1 to i32
    %c0_i32_9 = arith.constant 0 : i32
    %11 = arith.cmpi ne, %10, %c0_i32_9 : i32
    scf.if %11 {
      %c0_10 = arith.constant 0 : index
      %c0_11 = arith.constant 0 : index
      %12 = vector.load %arg7[%c0_10, %c0_11] : memref<64x512xf32, #tpu.memory_space<vmem>>, vector<64x512xf32>
      %c0_12 = arith.constant 0 : index
      %c0_13 = arith.constant 0 : index
      %13 = vector.load %arg5[%c0_12, %c0_13] : memref<1x512xf32, #tpu.memory_space<vmem>>, vector<1x512xf32>
      %14 = vector.broadcast %13 : vector<1x512xf32> to vector<64x512xf32>
      %15 = arith.addf %12, %14 : vector<64x512xf32>
      %16 = arith.truncf %15 : vector<64x512xf32> to vector<64x512xbf16>
      %c0_14 = arith.constant 0 : index
      %c0_15 = arith.constant 0 : index
      %17 = vector.load %arg6[%c0_14, %c0_15] : memref<64x512xbf16, #tpu.memory_space<vmem>>, vector<64x512xbf16>
      tpu.vector_store %arg6[%c0_14, %c0_15], %16 {strides = array<i32>} : memref<64x512xbf16, #tpu.memory_space<vmem>>, vector<64x512xbf16>,
    } else {
    }
    return
  }
  func.func @transform_0(%arg0: i32, %arg1: i32, %arg2: i32) -> (i32, i32) {
    %c0_i32 = arith.constant 0 : i32
    return %arg0, %arg2 : i32, i32
  }
  func.func @transform_1(%arg0: i32, %arg1: i32, %arg2: i32) -> (i32, i32) {
    %c0_i32 = arith.constant 0 : i32
    return %arg2, %arg1 : i32, i32
  }
  func.func @transform_2(%arg0: i32, %arg1: i32, %arg2: i32) -> (i32, i32) {
    %c0_i32 = arith.constant 0 : i32
    %c0_i32_0 = arith.constant 0 : i32
    return %c0_i32, %arg1 : i32, i32
  }
  func.func @transform_3(%arg0: i32, %arg1: i32, %arg2: i32) -> (i32, i32) {
    %c0_i32 = arith.constant 0 : i32
    return %arg0, %arg1 : i32, i32
  }
}

</mosaic_0001>

<bundles_post_ra>
// kernel: tpu_custom_call.1
= control target key start
LH: loop header
LB: loop body
LE: loop exit
PB: predicated region body
PF: predicated region fallthrough
CT: control target
= control target key end

     0   :  { %v662_v2 = vmov 0   ;;  %vm136_vm0 = vcmask 130048   ;;  %s773_s0 = inlined_call_operand.vmem [shape: bf16[64,16], index: 0, kind: input, shape index: {}]   ;;  %s774_s1 = inlined_call_operand.vmem [shape: bf16[16,512], index: 1, kind: input, shape index: {}]   ;;  %s775_s2 = inlined_call_operand.vmem [shape: f32[1,512], index: 2, kind: input, shape index: {}]   ;;  %s776_s3 = inlined_call_operand.hbm [shape: bf16[64,512], index: 3, kind: output, shape index: {}]  }
   0x1   :  { %v628_v0 = vld [vmem:[%s774_s1 + $0x4] ss:$16 sps:$4 sm:$0xff]   ;;  %v630_v1 = vld [vmem:[%s774_s1 + $0xc] ss:$16 sps:$4 sm:$0xff]   ;;  %181 = vmatprep.mubr.bf16.mxu0 %v662_v2  ;;  %254 = vmatprep.mubr.bf16.mxu1 %v662_v2  ;;  %v632_v3 = vld [vmem:[%s774_s1] ss:$16 sps:$4 sm:$0xff]  }
   0x2   :  { %149 = vmatprep.subr.bf16.mxu0 %v628_v0  ;;  %v633_v4 = vld [vmem:[%s774_s1 + $0x8] ss:$16 sps:$4 sm:$0xff]   ;;  %222 = vmatprep.subr.bf16.mxu1 %v630_v1  ;;  %v634_v5 = vld [vmem:[%s773_s0] sm:$0xff]  }
   0x3   :  { %150 = vmatpush1.bf16.msra.mxu0 %v632_v3  ;;  %223 = vmatpush1.bf16.msra.mxu1 %v633_v4 }
   0x4   :  { %8 = vsyncpa [#allocation4], 0  ;;  %v635_v6 = vld [vmem:[%s773_s0 + $0x8] sm:$0xff]   ;;  %v636_v7 = vld [vmem:[%s773_s0 + $0x10] sm:$0xff]   ;;  %v396_v9 = vlaneseq }
   0x5   :  { %v637_v8 = vld [vmem:[%s773_s0 + $0x18] sm:$0xff]   ;;  %v394_v13 = vld [vmem:[%s775_s2] sm:$0xf]  ;;  %s663_s0 = smov [#allocation3]  }
   0x6   :  { %584 = vmatmul.mubr.msk.bf16.vlgmr.msra.gmra.mrb[0].mxu0 %vm136_vm0, %v634_v5  ;;  %588 = vmatmul.mubr.msk.bf16.vlgmr.msra.gmra.mrb[0].mxu1 %vm136_vm0, %v634_v5  ;;  %v397_v10 = vshrl.u32 %v396_v9, 7  ;;  %s565_s2 = sshll.u32 %s663_s0, 4  ;;  %s566_s2 = int_to_ptr.vmem [resolvable:$true] %s565_s2 }
   0x7   :  { %191 = vmatprep.mubr.bf16.mxu0 %v662_v2  ;;  %264 = vmatprep.mubr.bf16.mxu1 %v662_v2  ;;  %s638_s29 = scalar_lea.vmem %s566_s2, 2048  ;;  %p643_p1 = scmp.lt.s32.totalorder %s566_s2, %s566_s2 }
   0x8   :  { %v398_v11 = vsub.s32 0, %v397_v10  ;;  %v406_v12 = vsub.s32 2, %v397_v10  ;;  %v402_v14 = vsub.s32 1, %v397_v10  ;;  %v410_v15 = vsub.s32 3, %v397_v10  ;;  %p639_p0 = scmp.ne.s32.totalorder %s566_s2, %s638_s29  ;;  %p644_p2 = scmp.lt.s32.totalorder %s638_s29, %s638_s29 }
   0xa   :  { %v721_v16 = vrot.slane %v394_v13, %v398_v11  ;;  %v723_v17 = vrot.slane %v394_v13, %v406_v12  ;;  %v725_v18 = vrot.slane %v394_v13, %v402_v14  ;;  %v727_v19 = vrot.slane %v394_v13, %v410_v15  ;;  %p645_p3 = por %p644_p2, %p643_p1 }
   0xc   :  { %p646_p4 = pnand %p645_p3, %p639_p0 }
   0xe   :  { %585 = vmatmul.mubr.msk.bf16.gmra.mrb[4].mxu0 %vm136_vm0, %v635_v6  ;;  %589 = vmatmul.mubr.msk.bf16.gmra.mrb[4].mxu1 %vm136_vm0, %v635_v6 }
   0xf   :  { %201 = vmatprep.mubr.bf16.mxu0 %v662_v2  ;;  %274 = vmatprep.mubr.bf16.mxu1 %v662_v2 }
  0x16   :  { %586 = vmatmul.mubr.msk.bf16.gmra.mrb[8].mxu0 %vm136_vm0, %v636_v7  ;;  %590 = vmatmul.mubr.msk.bf16.gmra.mrb[8].mxu1 %vm136_vm0, %v636_v7 }
  0x17   :  { %211 = vmatprep.mubr.bf16.mxu0 %v662_v2  ;;  %284 = vmatprep.mubr.bf16.mxu1 %v662_v2 }
  0x1e   :  { %587 = vmatmul.mubr.msk.bf16.gmra.mrb[12].mxu0 %vm136_vm0, %v637_v8  ;;  %591 = vmatmul.mubr.msk.bf16.gmra.mrb[12].mxu1 %vm136_vm0, %v637_v8 }
  0xd9   :  { %v183_v20 = vpop.f32.mrb[0].mxu0  ;;  %v256_v21 = vpop.f32.mrb[0].mxu1 }
  0xda   :  { %v416_v22 = vadd.f32 %v721_v16, %v183_v20  ;;  %v418_v23 = vadd.f32 %v723_v17, %v256_v21  ;;  %v185_v24 = vpop.f32.mrb[1].mxu0  ;;  %v258_v25 = vpop.f32.mrb[1].mxu1 }
  0xdb   :  { %v417_v26 = vadd.f32 %v725_v18, %v185_v24  ;;  %v419_v27 = vadd.f32 %v727_v19, %v258_v25  ;;  %v187_v28 = vpop.f32.mrb[2].mxu0  ;;  %v260_v29 = vpop.f32.mrb[2].mxu1 }
  0xdc   :  { %v420_v30 = vadd.f32 %v721_v16, %v187_v28  ;;  %v422_v31 = vadd.f32 %v723_v17, %v260_v29  ;;  %v189_v32 = vpop.f32.mrb[3].mxu0  ;;  %v262_v33 = vpop.f32.mrb[3].mxu1 }
  0xdd   :  { %v608_v34 = vpack.c.bf16 %v417_v26, %v416_v22  ;;  %v609_v35 = vpack.c.bf16 %v419_v27, %v418_v23  ;;  %v421_v36 = vadd.f32 %v725_v18, %v189_v32  ;;  %v423_v37 = vadd.f32 %v727_v19, %v262_v33 }
  0xdf   :  { %544 = vst [vmem:[#allocation3] sm:$0xff] %v608_v34  ;;  %545 = vst [vmem:[#allocation3 + $0x8] sm:$0xff] %v609_v35  ;;  %v610_v38 = vpack.c.bf16 %v421_v36, %v420_v30  ;;  %v611_v39 = vpack.c.bf16 %v423_v37, %v422_v31 }
  0xe1   :  { %546 = vst [vmem:[#allocation3 + $0x10] sm:$0xff] %v610_v38  ;;  %547 = vst [vmem:[#allocation3 + $0x18] sm:$0xff] %v611_v39  ;;  %v193_v40 = vpop.f32.mrb[4].mxu0  ;;  %v266_v41 = vpop.f32.mrb[4].mxu1 }
  0xe2   :  { %v424_v42 = vadd.f32 %v721_v16, %v193_v40  ;;  %v426_v43 = vadd.f32 %v723_v17, %v266_v41  ;;  %v195_v44 = vpop.f32.mrb[5].mxu0  ;;  %v268_v45 = vpop.f32.mrb[5].mxu1 }
  0xe3   :  { %v425_v46 = vadd.f32 %v725_v18, %v195_v44  ;;  %v427_v47 = vadd.f32 %v727_v19, %v268_v45  ;;  %v197_v48 = vpop.f32.mrb[6].mxu0  ;;  %v270_v49 = vpop.f32.mrb[6].mxu1 }
  0xe4   :  { %v428_v50 = vadd.f32 %v721_v16, %v197_v48  ;;  %v430_v51 = vadd.f32 %v723_v17, %v270_v49  ;;  %v199_v52 = vpop.f32.mrb[7].mxu0  ;;  %v272_v53 = vpop.f32.mrb[7].mxu1 }
  0xe5   :  { %v612_v54 = vpack.c.bf16 %v425_v46, %v424_v42  ;;  %v613_v55 = vpack.c.bf16 %v427_v47, %v426_v43  ;;  %v429_v56 = vadd.f32 %v725_v18, %v199_v52  ;;  %v431_v57 = vadd.f32 %v727_v19, %v272_v53 }
  0xe7   :  { %548 = vst [vmem:[#allocation3 + $0x20] sm:$0xff] %v612_v54  ;;  %549 = vst [vmem:[#allocation3 + $0x28] sm:$0xff] %v613_v55  ;;  %v614_v58 = vpack.c.bf16 %v429_v56, %v428_v50  ;;  %v615_v59 = vpack.c.bf16 %v431_v57, %v430_v51 }
  0xe9   :  { %550 = vst [vmem:[#allocation3 + $0x30] sm:$0xff] %v614_v58  ;;  %551 = vst [vmem:[#allocation3 + $0x38] sm:$0xff] %v615_v59  ;;  %v203_v60 = vpop.f32.mrb[8].mxu0  ;;  %v276_v61 = vpop.f32.mrb[8].mxu1 }
  0xea   :  { %v432_v62 = vadd.f32 %v721_v16, %v203_v60  ;;  %v434_v63 = vadd.f32 %v723_v17, %v276_v61  ;;  %v205_v0 = vpop.f32.mrb[9].mxu0  ;;  %v278_v1 = vpop.f32.mrb[9].mxu1 }
  0xeb   :  { %v433_v2 = vadd.f32 %v725_v18, %v205_v0  ;;  %v435_v3 = vadd.f32 %v727_v19, %v278_v1  ;;  %v207_v4 = vpop.f32.mrb[10].mxu0  ;;  %v280_v5 = vpop.f32.mrb[10].mxu1 }
  0xec   :  { %v436_v6 = vadd.f32 %v721_v16, %v207_v4  ;;  %v438_v7 = vadd.f32 %v723_v17, %v280_v5  ;;  %v209_v8 = vpop.f32.mrb[11].mxu0  ;;  %v282_v9 = vpop.f32.mrb[11].mxu1 }
  0xed   :  { %v616_v10 = vpack.c.bf16 %v433_v2, %v432_v62  ;;  %v617_v11 = vpack.c.bf16 %v435_v3, %v434_v63  ;;  %v437_v12 = vadd.f32 %v725_v18, %v209_v8  ;;  %v439_v13 = vadd.f32 %v727_v19, %v282_v9 }
  0xef   :  { %552 = vst [vmem:[#allocation3 + $0x40] sm:$0xff] %v616_v10  ;;  %553 = vst [vmem:[#allocation3 + $0x48] sm:$0xff] %v617_v11  ;;  %v618_v14 = vpack.c.bf16 %v437_v12, %v436_v6  ;;  %v619_v15 = vpack.c.bf16 %v439_v13, %v438_v7 }
  0xf1   :  { %554 = vst [vmem:[#allocation3 + $0x50] sm:$0xff] %v618_v14  ;;  %555 = vst [vmem:[#allocation3 + $0x58] sm:$0xff] %v619_v15  ;;  %v213_v20 = vpop.f32.mrb[12].mxu0  ;;  %v286_v21 = vpop.f32.mrb[12].mxu1 }
  0xf2   :  { %v440_v22 = vadd.f32 %v721_v16, %v213_v20  ;;  %v442_v23 = vadd.f32 %v723_v17, %v286_v21  ;;  %v215_v24 = vpop.f32.mrb[13].mxu0  ;;  %v288_v25 = vpop.f32.mrb[13].mxu1 }
  0xf3   :  { %v441_v26 = vadd.f32 %v725_v18, %v215_v24  ;;  %v443_v27 = vadd.f32 %v727_v19, %v288_v25  ;;  %v217_v28 = vpop.f32.mrb[14].mxu0  ;;  %v290_v29 = vpop.f32.mrb[14].mxu1 }
  0xf4   :  { %v444_v30 = vadd.f32 %v721_v16, %v217_v28  ;;  %v446_v31 = vadd.f32 %v723_v17, %v290_v29  ;;  %v219_v32 = vpop.f32.mrb[15].mxu0  ;;  %v292_v33 = vpop.f32.mrb[15].mxu1 }
  0xf5   :  { %v620_v34 = vpack.c.bf16 %v441_v26, %v440_v22  ;;  %v621_v35 = vpack.c.bf16 %v443_v27, %v442_v23  ;;  %v445_v36 = vadd.f32 %v725_v18, %v219_v32  ;;  %v447_v37 = vadd.f32 %v727_v19, %v292_v33 }
  0xf7   :  { %556 = vst [vmem:[#allocation3 + $0x60] sm:$0xff] %v620_v34  ;;  %557 = vst [vmem:[#allocation3 + $0x68] sm:$0xff] %v621_v35  ;;  %v622_v38 = vpack.c.bf16 %v445_v36, %v444_v30  ;;  %v623_v39 = vpack.c.bf16 %v447_v37, %v446_v31 }
  0xf9   :  { %558 = vst [vmem:[#allocation3 + $0x70] sm:$0xff] %v622_v38  ;;  %559 = vst [vmem:[#allocation3 + $0x78] sm:$0xff] %v623_v39 }
  0xfa   :  { %649 = shalt.err (!%p646_p4)
}
  0xfb   :  { %s650_s5 = scalar_lea.hbm %s776_s3, 2048 }
  0xfc   :  { %p651_p5 = scmp.ne.s32.totalorder %s776_s3, %s650_s5  ;;  %p654_p6 = scmp.lt.u32.totalorder %s650_s5, %s776_s3 }
  0xfe   :  { %p656_p7 = pnand %p654_p6, %p651_p5 }
 0x100   :  { %659 = shalt.err (!%p656_p7)
}
 0x101   :  { %s664_s10 = smov 256   ;;  %s665_s11 = smov 16  }
 0x102   :  { %571 = dma.vmem_to_hbm [thread:$0]  %s566_s2, 2048, %s776_s3, [#allocation4], %s664_s10, %s664_s10, %s665_s11  }
 0x103   :  { %660 = dma.done.wait [#allocation4], 2048  }
 0x104   :  { %661 = vsyncadd [#allocation4], 4294965248 }
 0x105   :  { %575 = vsyncpa [#allocation4], 1 }

</bundles_post_ra>
